<compile_context>
chip_gen: v7x
topology: tpu7x:2x2x1
jax: 0.10.0
libtpu: 0.0.40
codegen_flags: <defaults>
</compile_context>

<pallas_src>
import math

import jax
import jax.numpy as jnp
from jax.experimental import pallas as pl
from jax.experimental.pallas import tpu as pltpu


def _pick_row_tile(H, W):
    """Row tile TH dividing H with TH*(W+2) % 8 == 0 (sublane-aligned blocks)."""
    for th in (8, 4, 2, 1, 16, 32):
        if th <= H and H % th == 0 and (th * (W + 2)) % 8 == 0:
            return th
    return H  # full extent is always a legal block dim


def _make_conv_bn_relu_kernel(W, KH, KW):
    Wp = W + 2  # padded row width

    def kernel(x_ref, w_ref, scale_ref, bias_ref, o_ref):
        # x_ref     : ((H+3)*(W+2), Cin)   bf16  flattened padded image (resident per batch elem)
        # w_ref     : (KH*KW*Cin, Cout_pad) bf16 taps fused into the contraction dim
        # scale_ref : (1, Cout_pad) f32    folded BN scale
        # bias_ref  : (1, Cout_pad) f32    folded BN bias
        # o_ref     : (TH*(W+2), Cout_pad) f32  lane-dense output tile
        M = o_ref.shape[0]                       # rows of this tile (TH*(W+2))
        base = pl.multiple_of(pl.program_id(1) * M, math.gcd(M, 8))
        win_len = M + (KH - 1) * Wp + (KW - 1)   # tile rows + halo overshoot
        win = x_ref[pl.ds(base, win_len), :]     # single dynamic sublane-offset load

        # im2col: each tap is a contiguous static row-offset slice of `win`;
        # concatenated along lanes -> (M, KH*KW*Cin) patch feeding one matmul.
        pieces = [win[kh * Wp + kw: kh * Wp + kw + M, :]
                  for kh in range(KH) for kw in range(KW)]
        patch = jnp.concatenate(pieces, axis=-1)          # bf16 already

        acc = jnp.dot(patch, w_ref[...], preferred_element_type=jnp.float32)

        # Folded BatchNorm (inference) + ReLU, f32 epilogue, lane-dense store.
        y = acc * scale_ref[...] + bias_ref[...]
        o_ref[...] = jnp.maximum(y, 0.0).astype(o_ref.dtype)

    return kernel


def conv_block_forward(x_nchw, weight, gamma, beta, running_mean, running_var,
                       eps=1e-5):
    """ConvBlock forward: Conv2d(3x3, pad=1, bias=False) -> BN(eval) -> ReLU.

    x_nchw : (B, Cin, H, W)    float32
    weight : (Cout, Cin, 3, 3) float32 (PyTorch OIHW layout)
    returns: (B, Cout, H, W)   float32
    """
    B, Cin, H, W = x_nchw.shape
    Cout, _, KH, KW = weight.shape
    Wp = W + 2
    LANES = 128
    Cp = ((Cout + LANES - 1) // LANES) * LANES   # lane-dense padded Cout

    # ---- glue (layout only, no heavy compute) ------------------------------
    # NCHW -> NHWC, halo pad (top 1 / bottom 2 / left 1 / right 1), flatten
    # (H, W) onto the sublane axis so every 3x3 tap is a contiguous row slice.
    # Stored as bf16: it only ever feeds the MXU (halves HBM->VMEM DMA bytes).
    x_nhwc = jnp.transpose(x_nchw, (0, 2, 3, 1)).astype(jnp.bfloat16)
    x_pad = jnp.pad(x_nhwc, ((0, 0), (1, 2), (1, 1), (0, 0)))
    x_flat = x_pad.reshape(B, (H + 3) * Wp, Cin)

    # Fold BN (inference) into per-channel scale/bias; pad to Cout_pad lanes.
    scale = (gamma / jnp.sqrt(running_var + eps)).astype(jnp.float32)
    bias = (beta - running_mean * scale).astype(jnp.float32)
    scale_p = jnp.zeros((1, Cp), jnp.float32).at[0, :Cout].set(scale)
    bias_p = jnp.zeros((1, Cp), jnp.float32).at[0, :Cout].set(bias)

    # Weight: OIHW -> (KH*KW*Cin, Cout_pad), bf16, taps fused into K.
    w_hwio = jnp.transpose(weight, (2, 3, 1, 0)).reshape(KH * KW * Cin, Cout)
    w_mat = jnp.zeros((KH * KW * Cin, Cp), jnp.float32).at[:, :Cout].set(w_hwio)
    w_mat = w_mat.astype(jnp.bfloat16)

    TH = _pick_row_tile(H, W)
    n_th = H // TH
    M = TH * Wp
    Mtot = (H + 3) * Wp

    kernel = _make_conv_bn_relu_kernel(W, KH, KW)

    out_flat = pl.pallas_call(
        kernel,
        out_shape=jax.ShapeDtypeStruct((B, H * Wp, Cp), jnp.float32),
        grid_spec=pltpu.PrefetchScalarGridSpec(
            num_scalar_prefetch=0,
            grid=(B, n_th),
            in_specs=[
                # full padded image per batch element; block index does not change
                # along the row-tile axis -> fetched once per batch element.
                pl.BlockSpec((None, Mtot, Cin), lambda b, i: (b, 0, 0)),
                pl.BlockSpec((KH * KW * Cin, Cp), lambda b, i: (0, 0)),
                pl.BlockSpec((1, Cp), lambda b, i: (0, 0)),
                pl.BlockSpec((1, Cp), lambda b, i: (0, 0)),
            ],
            out_specs=pl.BlockSpec((None, M, Cp), lambda b, i: (b, i, 0)),
        ),
        compiler_params=pltpu.CompilerParams(
            dimension_semantics=("parallel", "parallel"),
            vmem_limit_bytes=64 * 1024 * 1024,
        ),
    )(x_flat, w_mat, scale_p, bias_p)

    # Drop the 2 garbage columns per row and the Cout padding; back to NCHW.
    out = out_flat.reshape(B, H, Wp, Cp)[:, :, :W, :Cout]
    return jnp.transpose(out, (0, 3, 1, 2))


def _reference(x_nchw, weight, gamma, beta, running_mean, running_var, eps=1e-5):
    """Plain-JAX f32 reference (conv -> BN(eval) -> ReLU)."""
    y = jax.lax.conv_general_dilated(
        x_nchw, weight, window_strides=(1, 1), padding=((1, 1), (1, 1)),
        dimension_numbers=("NCHW", "OIHW", "NCHW"))
    scale = gamma / jnp.sqrt(running_var + eps)
    bias = beta - running_mean * scale
    y = y * scale[None, :, None, None] + bias[None, :, None, None]
    return jnp.maximum(y, 0.0)


if __name__ == "__main__":
    key = jax.random.PRNGKey(0)
    k_x, k_w, k_g, k_b, k_m, k_v = jax.random.split(key, 6)

    B, Cin, Cout, H, W = 2, 4, 8, 16, 16

    x = jax.random.normal(k_x, (B, Cin, H, W), dtype=jnp.float32)
    weight = jax.random.normal(k_w, (Cout, Cin, 3, 3), dtype=jnp.float32) * 0.1
    gamma = jax.random.uniform(k_g, (Cout,), dtype=jnp.float32, minval=0.5, maxval=1.5)
    beta = jax.random.normal(k_b, (Cout,), dtype=jnp.float32) * 0.1
    running_mean = jax.random.normal(k_m, (Cout,), dtype=jnp.float32) * 0.1
    running_var = jax.random.uniform(k_v, (Cout,), dtype=jnp.float32,
                                     minval=0.5, maxval=1.5)

    out = conv_block_forward(x, weight, gamma, beta, running_mean, running_var)
    out = jax.block_until_ready(out)

    ref = _reference(x, weight, gamma, beta, running_mean, running_var)
    assert out.shape == (B, Cout, H, W)
    # bf16 matmul inputs (f32 accumulation) -> relaxed tolerance vs f32 reference.
    assert jnp.allclose(out, ref, atol=5e-2, rtol=5e-2), "mismatch vs reference"

    print("KERNEL_OK")
</pallas_src>

<mosaic_0001>
module attributes {stable_mosaic.version = 11 : i64} {
  func.func @kernel(%arg0: i32, %arg1: i32, %arg2: memref<1x342x4xbf16, #tpu.memory_space<vmem>>, %arg3: memref<36x128xbf16, #tpu.memory_space<vmem>>, %arg4: memref<1x128xf32, #tpu.memory_space<vmem>>, %arg5: memref<1x128xf32, #tpu.memory_space<vmem>>, %arg6: memref<1x144x128xf32, #tpu.memory_space<vmem>>) attributes {dimension_semantics = [#tpu.dimension_semantics<parallel>, #tpu.dimension_semantics<parallel>], iteration_bounds = array<i64: 2, 2>, scalar_prefetch = 0 : i64, scratch_operands = 0 : i64, tpu.core_type = #tpu.core_type<tc>, window_params = [{transform_indices = @transform_0, window_bounds = array<i64: 1, 342, 4>}, {pipeline_mode = #tpu.pipeline_mode<synchronous>, transform_indices = @transform_1, window_bounds = array<i64: 36, 128>}, {pipeline_mode = #tpu.pipeline_mode<synchronous>, transform_indices = @transform_2, window_bounds = array<i64: 1, 128>}, {pipeline_mode = #tpu.pipeline_mode<synchronous>, transform_indices = @transform_3, window_bounds = array<i64: 1, 128>}, {transform_indices = @transform_4, window_bounds = array<i64: 1, 144, 128>}]} {
    %c144_i32 = arith.constant 144 : i32
    %0 = arith.muli %arg1, %c144_i32 : i32
    %1 = tpu.assume_multiple %0, 8 : i32
    %c0 = arith.constant 0 : index
    %2 = arith.index_cast %1 : i32 to index
    %c0_0 = arith.constant 0 : index
    %3 = vector.load %arg2[%c0, %2, %c0_0] : memref<1x342x4xbf16, #tpu.memory_space<vmem>>, vector<1x182x4xbf16>
    %4 = vector.shape_cast %3 : vector<1x182x4xbf16> to vector<182x4xbf16>
    %5 = vector.extract_strided_slice %4 {offsets = [0, 0], sizes = [144, 4], strides = [1, 1]} : vector<182x4xbf16> to vector<144x4xbf16>
    %6 = vector.extract_strided_slice %4 {offsets = [1, 0], sizes = [144, 4], strides = [1, 1]} : vector<182x4xbf16> to vector<144x4xbf16>
    %7 = vector.extract_strided_slice %4 {offsets = [2, 0], sizes = [144, 4], strides = [1, 1]} : vector<182x4xbf16> to vector<144x4xbf16>
    %8 = vector.extract_strided_slice %4 {offsets = [18, 0], sizes = [144, 4], strides = [1, 1]} : vector<182x4xbf16> to vector<144x4xbf16>
    %9 = vector.extract_strided_slice %4 {offsets = [19, 0], sizes = [144, 4], strides = [1, 1]} : vector<182x4xbf16> to vector<144x4xbf16>
    %10 = vector.extract_strided_slice %4 {offsets = [20, 0], sizes = [144, 4], strides = [1, 1]} : vector<182x4xbf16> to vector<144x4xbf16>
    %11 = vector.extract_strided_slice %4 {offsets = [36, 0], sizes = [144, 4], strides = [1, 1]} : vector<182x4xbf16> to vector<144x4xbf16>
    %12 = vector.extract_strided_slice %4 {offsets = [37, 0], sizes = [144, 4], strides = [1, 1]} : vector<182x4xbf16> to vector<144x4xbf16>
    %13 = vector.extract_strided_slice %4 {offsets = [38, 0], sizes = [144, 4], strides = [1, 1]} : vector<182x4xbf16> to vector<144x4xbf16>
    %14 = tpu.concatenate %5, %6, %7, %8, %9, %10, %11, %12, %13 in 1 : vector<144x4xbf16>, vector<144x4xbf16>, vector<144x4xbf16>, vector<144x4xbf16>, vector<144x4xbf16>, vector<144x4xbf16>, vector<144x4xbf16>, vector<144x4xbf16>, vector<144x4xbf16> -> vector<144x36xbf16>
    %c0_1 = arith.constant 0 : index
    %c0_2 = arith.constant 0 : index
    %15 = vector.load %arg3[%c0_1, %c0_2] : memref<36x128xbf16, #tpu.memory_space<vmem>>, vector<36x128xbf16>
    %cst = arith.constant dense<0.000000e+00> : vector<144x128xf32>
    %16 = tpu.matmul %14, %15, %cst {dimension_numbers = #tpu.dot_dimension_numbers<[1], [0], [0], [1], [0, 0, 1, 1], [], []>} : vector<144x36xbf16>, vector<36x128xbf16>, vector<144x128xf32> -> vector<144x128xf32>
    %c0_3 = arith.constant 0 : index
    %c0_4 = arith.constant 0 : index
    %17 = vector.load %arg4[%c0_3, %c0_4] : memref<1x128xf32, #tpu.memory_space<vmem>>, vector<1x128xf32>
    %18 = vector.broadcast %17 : vector<1x128xf32> to vector<144x128xf32>
    %19 = arith.mulf %16, %18 : vector<144x128xf32>
    %c0_5 = arith.constant 0 : index
    %c0_6 = arith.constant 0 : index
    %20 = vector.load %arg5[%c0_5, %c0_6] : memref<1x128xf32, #tpu.memory_space<vmem>>, vector<1x128xf32>
    %21 = vector.broadcast %20 : vector<1x128xf32> to vector<144x128xf32>
    %22 = arith.addf %19, %21 : vector<144x128xf32>
    %cst_7 = arith.constant 0.000000e+00 : f32
    %23 = vector.broadcast %cst_7 : f32 to vector<144x128xf32>
    %24 = arith.maximumf %22, %23 : vector<144x128xf32>
    %c0_8 = arith.constant 0 : index
    %c0_9 = arith.constant 0 : index
    %c0_10 = arith.constant 0 : index
    %25 = vector.load %arg6[%c0_8, %c0_9, %c0_10] : memref<1x144x128xf32, #tpu.memory_space<vmem>>, vector<1x144x128xf32>
    %26 = vector.shape_cast %25 : vector<1x144x128xf32> to vector<144x128xf32>
    %27 = vector.shape_cast %24 : vector<144x128xf32> to vector<1x144x128xf32>
    tpu.vector_store %arg6[%c0_8, %c0_9, %c0_10], %27 {strides = array<i32>} : memref<1x144x128xf32, #tpu.memory_space<vmem>>, vector<1x144x128xf32>,
    return
  }
  func.func @transform_0(%arg0: i32, %arg1: i32) -> (i32, i32, i32) {
    %c0_i32 = arith.constant 0 : i32
    %c0_i32_0 = arith.constant 0 : i32
    %c0_i32_1 = arith.constant 0 : i32
    return %arg0, %c0_i32, %c0_i32_0 : i32, i32, i32
  }
  func.func @transform_1(%arg0: i32, %arg1: i32) -> (i32, i32) {
    %c0_i32 = arith.constant 0 : i32
    %c0_i32_0 = arith.constant 0 : i32
    %c0_i32_1 = arith.constant 0 : i32
    return %c0_i32, %c0_i32_0 : i32, i32
  }
  func.func @transform_2(%arg0: i32, %arg1: i32) -> (i32, i32) {
    %c0_i32 = arith.constant 0 : i32
    %c0_i32_0 = arith.constant 0 : i32
    %c0_i32_1 = arith.constant 0 : i32
    return %c0_i32, %c0_i32_0 : i32, i32
  }
  func.func @transform_3(%arg0: i32, %arg1: i32) -> (i32, i32) {
    %c0_i32 = arith.constant 0 : i32
    %c0_i32_0 = arith.constant 0 : i32
    %c0_i32_1 = arith.constant 0 : i32
    return %c0_i32, %c0_i32_0 : i32, i32
  }
  func.func @transform_4(%arg0: i32, %arg1: i32) -> (i32, i32, i32) {
    %c0_i32 = arith.constant 0 : i32
    %c0_i32_0 = arith.constant 0 : i32
    return %arg0, %arg1, %c0_i32 : i32, i32, i32
  }
}

</mosaic_0001>

<bundles_post_ra>
// kernel: tpu_custom_call.1
= control target key start
LH: loop header
LB: loop body
LE: loop exit
PB: predicated region body
PF: predicated region fallthrough
CT: control target
= control target key end

     0   :  { %s2900_s0 = inlined_call_operand.hbm [shape: bf16[2,342,4], index: 0, kind: input, shape index: {}]   ;;  %s2901_s1 = inlined_call_operand.hbm [shape: bf16[36,128], index: 1, kind: input, shape index: {}]   ;;  %s2902_s2 = inlined_call_operand.hbm [shape: f32[1,128], index: 2, kind: input, shape index: {}]   ;;  %s2903_s3 = inlined_call_operand.hbm [shape: f32[1,128], index: 3, kind: input, shape index: {}]   ;;  %s2904_s4 = inlined_call_operand.hbm [shape: f32[2,288,128], index: 4, kind: output, shape index: {}]  }
   0x1   :  { %2934 = sst [smem:[#allocation26_spill]] %s2901_s1 }
   0x2   :  { %2935 = sst [smem:[#allocation27_spill]] %s2902_s2 }
   0x3   :  { %2936 = sst [smem:[#allocation28_spill]] %s2904_s4 }
   0x4   :  { %9 = vsyncpa [#allocation3], 0 }
   0x5   :  { %11 = vsyncpa [#allocation3 + $0x1], 0 }
   0x6   :  { %12 = vsyncpa [#allocation6], 0 }
   0x7   :  { %13 = vsyncpa [#allocation9], 0 }
   0x8   :  { %14 = vsyncpa [#allocation4], 0 }
   0x9   :  { %16 = vsyncpa [#allocation4 + $0x1], 0  ;;  %s1830_s15 = smov 0   ;;  %s1832_s16 = smov 0  }
   0xa   :  { %s1834_s17 = smov 0   ;;  %s1836_s18 = smov 0  }
   0xb   :  { %s1838_s19 = smov 0   ;;  %s1840_s20 = smov 0  }
   0xc   :  { %s1842_s21 = smov 0   ;;  %s1844_s22 = smov 0  }
   0xd   :  { %s1846_s23 = smov 0   ;;  %s1848_s24 = smov 0  }
   0xe   :  { %s1850_s25 = smov 0  }
   0xf LB: > { %2937 = sst [smem:[#allocation15_spill]] %s1745_s15  ;;  %s1269_s26 = sadd.s32 4294967295, %s1785_s25   ;;  %s1785_s25 = sphi %s1850_s25, %s22_s25   ;;  %s1781_s24 = sphi %s1848_s24, %s3010_s24   ;;  %s1777_s23 = sphi %s1846_s23, %s3009_s23   ;;  %s1773_s22 = sphi %s1844_s22, %s3008_s22   ;;  %s1769_s21 = sphi %s1842_s21, %s3007_s21   ;;  %s1765_s20 = sphi %s1840_s20, %s3006_s20   ;;  %s1761_s19 = sphi %s1838_s19, %s3005_s19   ;;  %s1757_s18 = sphi %s1836_s18, %s3004_s18   ;;  %s1753_s17 = sphi %s1834_s17, %s3003_s17   ;;  %s1749_s16 = sphi %s1832_s16, %s3002_s16   ;;  %s1745_s15 = sphi %s1830_s15, %s3001_s15  }
  0x10   : > { %2938 = sst [smem:[#allocation16_spill]] %s1773_s22  ;;  %s1270_s27 = sadd.s32 4294967294, %s1785_s25  }
  0x11   : > { %p54_p0 = scmp.ne.s32.totalorder %s1761_s19, %s1757_s18  ;;  %p1886_p1 = scmp.eq.s32.totalorder %s1269_s26, 0 }
  0x12   : > { %p142_p2 = scmp.ne.s32.totalorder %s1753_s17, %s1749_s16  ;;  %p143_p4 = scmp.eq.s32.totalorder %s1269_s26, 3 }
  0x13   : > { %s2939_s28 = scalar_select %p1886_p1, 1, 0 }
  0x14   : > { %p1895_p3 = por %p1886_p1, %p54_p0  ;;  %p148_p5 = scmp.ne.s32.totalorder %s1749_s16, %s1745_s15 }
  0x15   : > { %p149_p6 = scmp.eq.s32.totalorder %s1270_s27, 3  ;;  %p1901_p7 = por %p143_p4, %p142_p2 }
  0x16   : > { %s2940_s30 = scalar_select %p1895_p3, 1, 0 }
  0x17   : > { %s2941_s5 = scalar_select %p1901_p7, 1, 0 }
  0x18   : > { %p1271_p8 = scmp.ge.s32.totalorder %s1785_s25, 1  ;;  %p1906_p9 = por %p149_p6, %p148_p5 }
  0x19   : > { %2942 = sst [smem:[#allocation17_spill]] %s2941_s5  ;;  %p156_p10 = scmp.lt.s32.totalorder %s1785_s25, 5 }
  0x1a   : > { %s2943_s6 = scalar_select %p1906_p9, 1, 0 }
  0x1b   : > { %p1911_p11 = pnand %p1271_p8, %p156_p10  ;;  %s1787_s8 = smov [#allocation5]  }
  0x1c   : > { %2944 = sst [smem:[#allocation18_spill]] %s2943_s6  ;;  %s168_s9 = sshll.u32 %s1787_s8, 4  ;;  %s1915_s9 = int_to_ptr.vmem [resolvable:$true] %s168_s9 }
  0x1d   : > { %s2945_s7 = scalar_select %p1911_p11, 1, 0 }
  0x1e   : > { %p1394_p12 = pneg %p1911_p11  ;;  %s1788_s11 = smov [#allocation7]  }
  0x1f   : > { %s182_s12 = sshll.u32 %s1788_s11, 4  ;;  %s1789_s13 = smov [#allocation8]   ;;  %s1925_s12 = int_to_ptr.vmem [resolvable:$true] %s182_s12 }
  0x20   : > { %p1921_p13 = pnand %p1394_p12, %p1886_p1  ;;  %s1927_s14 = sshll.u32 %s1789_s13, 4  ;;  %s194_s14 = int_to_ptr.vmem [resolvable:$true] %s1927_s14 }
  0x21   : > { %s2947_s1 = sld [smem:[#allocation26_spill]] }
  0x22   : > { %p1937_p2 = pneg %p1921_p13 }
  0x27   : > { %s1541_s27 = scalar_lea.hbm %s2947_s1, 320 }
  0x28   : > { %p1542_p0 = scmp.ne.s32.totalorder %s2947_s1, %s1541_s27  ;;  %p1548_p6 = scmp.lt.u32.totalorder %s1541_s27, %s2947_s1 }
  0x2a   : > { %p1544_p4 = pnand %p1937_p2, %p1542_p0 }
  0x2c   : > { %p1545_p5 = pneg %p1544_p4 }
  0x2e   : > { %p1550_p8 = pnand %p1548_p6, %p1545_p5 }
  0x30   : > { %1553 = shalt.err (!%p1550_p8)
}
  0x31   : > { %s1554_s29 = scalar_lea.vmem %s1915_s9, 320  ;;  %p1562_p7 = scmp.lt.s32.totalorder %s1915_s9, %s1915_s9 }
  0x32   : > { %p1555_p10 = scmp.ne.s32.totalorder %s1915_s9, %s1554_s29  ;;  %p1563_p1 = scmp.lt.s32.totalorder %s1554_s29, %s1554_s29 }
  0x34   : > { %p1557_p12 = pnand %p1555_p10, %p1937_p2  ;;  %p1564_p0 = por %p1563_p1, %p1562_p7 }
  0x36   : > { %p1558_p9 = pneg %p1557_p12 }
  0x38   : > { %p1565_p4 = pnand %p1564_p0, %p1558_p9 }
  0x3a   : > { %1568 = shalt.err (!%p1565_p4)
}
  0x3b   : > { %s2915_s18 = smov 64   ;;  %s2916_s26 = smov 4  }
  0x3c   : > { %1397 = dma.hbm_to_vmem [thread:$0]  (!%p1921_p13), %s2947_s1, 320, %s1915_s9, [#allocation6], %s2915_s18, %s2915_s18, %s2916_s26  }
  0x3d   : > { %s2949_s2 = sld [smem:[#allocation27_spill]] }
  0x43   : > { %s1569_s29 = scalar_lea.hbm %s2949_s2, 16 }
  0x44   : > { %p1570_p1 = scmp.ne.s32.totalorder %s2949_s2, %s1569_s29  ;;  %p1576_p5 = scmp.lt.u32.totalorder %s1569_s29, %s2949_s2 }
  0x46   : > { %p1572_p7 = pnand %p1570_p1, %p1937_p2 }
  0x48   : > { %p1573_p9 = pneg %p1572_p7 }
  0x4a   : > { %p1578_p6 = pnand %p1576_p5, %p1573_p9 }
  0x4c   : > { %1581 = shalt.err (!%p1578_p6)
}
  0x4d   : > { %s1582_s9 = scalar_lea.vmem %s1925_s12, 16  ;;  %s1589_s4 = scalar_lea.vmem %s1925_s12, 32 }
  0x4e   : > { %p1583_p8 = scmp.ne.s32.totalorder %s1925_s12, %s1582_s9  ;;  %p1590_p0 = scmp.lt.s32.totalorder %s1925_s12, %s1925_s12 }
  0x4f   : > { %p1591_p4 = scmp.lt.s32.totalorder %s1589_s4, %s1582_s9 }
  0x50   : > { %p1585_p10 = pnand %p1583_p8, %p1937_p2 }
  0x51   : > { %p1592_p1 = por %p1591_p4, %p1590_p0 }
  0x52   : > { %p1586_p12 = pneg %p1585_p10 }
  0x54   : > { %p1593_p7 = pnand %p1592_p1, %p1586_p12 }
  0x56   : > { %1596 = shalt.err (!%p1593_p7)
}
  0x57   : > { %1400 = dma.hbm_to_vmem [thread:$0]  (!%p1921_p13), %s2949_s2, 16, %s1925_s12, [#allocation6]  }
  0x58   : > { %s1597_s8 = scalar_lea.hbm %s2903_s3, 16 }
  0x59   : > { %p1598_p9 = scmp.ne.s32.totalorder %s2903_s3, %s1597_s8  ;;  %p1604_p8 = scmp.lt.u32.totalorder %s1597_s8, %s2903_s3 }
  0x5b   : > { %p1600_p5 = pnand %p1598_p9, %p1937_p2 }
  0x5d   : > { %p1601_p6 = pneg %p1600_p5 }
  0x5f   : > { %p1606_p10 = pnand %p1604_p8, %p1601_p6 }
  0x61   : > { %1609 = shalt.err (!%p1606_p10)
}
  0x62   : > { %s1610_s4 = scalar_lea.vmem %s194_s14, 16  ;;  %s1617_s12 = scalar_lea.vmem %s194_s14, 32 }
  0x63   : > { %p1611_p12 = scmp.ne.s32.totalorder %s194_s14, %s1610_s4  ;;  %p1618_p1 = scmp.lt.s32.totalorder %s194_s14, %s194_s14 }
  0x64   : > { %p1619_p7 = scmp.lt.s32.totalorder %s1617_s12, %s1610_s4 }
  0x65   : > { %p1613_p0 = pnand %p1611_p12, %p1937_p2 }
  0x66   : > { %p1620_p3 = por %p1619_p7, %p1618_p1 }
  0x67   : > { %p1614_p4 = pneg %p1613_p0 }
  0x69   : > { %p1621_p11 = pnand %p1620_p3, %p1614_p4 }
  0x6b   : > { %1624 = shalt.err (!%p1621_p11)
}
  0x6c   : > { %1403 = dma.hbm_to_vmem [thread:$0]  (!%p1921_p13), %s2903_s3, 16, %s194_s14, [#allocation9]  }
  0x6d   : > { %s31_s6 = sadd.s32 1, %s1777_s23  ;;  %s34_s5 = sadd.s32 1, %s1781_s24 }
  0x6e   : > { %p32_p3 = scmp.ge.s32.totalorder %s31_s6, 2  ;;  %s41_s10 = sadd.s32 1, %s1765_s20 }
  0x6f   : > { %p48_p11 = scmp.ne.s32.totalorder %s1765_s20, %s1761_s19  ;;  %p49_p2 = scmp.eq.s32.totalorder %s1785_s25, 0 }
  0x70   : > { %s3012_s6 = smov (%p32_p3, %s31_s6), 0  ;;  %s3014_s5 = smov (!%p32_p3, %s34_s5), %s1781_s24 }
  0x71   : > { %s128_s27 = ssub.s32 %s1777_s23, %s3012_s6  ;;  %p36_p9 = scmp.ge.s32.totalorder %s3014_s5, 2 }
  0x72   : > { %p1415_p5 = scmp.lt.s32.totalorder %s1785_s25, 4  ;;  %p2016_p13 = por %p49_p2, %p48_p11 }
  0x73   : > { %s204_s8 = sand.u32 1, %s1765_s20   ;;  %s3016_s5 = smov (%p36_p9, %s3014_s5), 0 }
  0x74   : > { %s1373_s11 = smul.u32 172, %s204_s8  ;;  %s38_s13 = ssub.s32 %s1781_s24, %s3016_s5 }
  0x75   : > { %s1374_s29 = smul.u32 2752, %s1781_s24  ;;  %p39_p6 = scmp.eq.s32.totalorder %s38_s13, 0 }
  0x76   : > { %s129_s9 = sor.u32 %s128_s27, %s38_s13  ;;  %s2951_s12 = sadd.s32 1, %s1753_s17 }
  0x77   : > { %p130_p8 = scmp.eq.s32.totalorder %s129_s9, 0  ;;  %s2037_s26 = scalar_lea.hbm %s2900_s0, %s1374_s29 }
  0x78   : > { %s2027_s4 = scalar_select %p39_p6, %s1765_s20, %s41_s10  }
  0x79   : > { %s2032_s15 = scalar_select %p130_p8, %s1753_s17, %s2951_s12  }
  0x7a   : > { %s208_s1 = scalar_lea.vmem [#allocation2], %s1373_s11  ;;  %p2045_p10 = pnand %p1415_p5, %p2016_p13 }
  0x7b   : > { %s215_s2 = sshll.u32 %s208_s1, 4  ;;  %s2049_s27 = scalar_lea.sflag [#allocation3], %s204_s8  ;;  %s2039_s2 = int_to_ptr.vmem [resolvable:$true] %s215_s2 }
  0x7c   : > { %s1625_s18 = scalar_lea.hbm %s2037_s26, 2752  ;;  %p1627_p0 = pneg %p2045_p10 }
  0x7d   : > { %p1626_p12 = scmp.ne.s32.totalorder %s2037_s26, %s1625_s18  ;;  %s1630_s14 = scalar_lea.hbm %s2900_s0, 5504 }
  0x7e   : > { %p1631_p7 = scmp.lt.u32.totalorder %s2037_s26, %s2900_s0  ;;  %p1632_p3 = scmp.lt.u32.totalorder %s1630_s14, %s1625_s18 }
  0x7f   : > { %p1628_p4 = pnand %p1627_p0, %p1626_p12  ;;  %p1634_p2 = scmp.lt.u32.totalorder %s1625_s18, %s2037_s26 }
  0x80   : > { %p1633_p11 = por %p1632_p3, %p1631_p7 }
  0x81   : > { %p1629_p1 = pneg %p1628_p4 }
  0x82   : > { %p1635_p9 = por %p1634_p2, %p1633_p11 }
  0x84   : > { %p1636_p5 = pnand %p1635_p9, %p1629_p1 }
  0x86   : > { %1639 = shalt.err (!%p1636_p5)
}
  0x87   : > { %s1640_s8 = scalar_lea.vmem %s2039_s2, 2752  ;;  %s1792_s9 = smov [#allocation2]  }
  0x88   : > { %p1641_p13 = scmp.ne.s32.totalorder %s2039_s2, %s1640_s8  ;;  %s1645_s12 = sshll.u32 %s1792_s9, 4  ;;  %s1646_s12 = int_to_ptr.vmem [resolvable:$false] %s1645_s12 }
  0x89   : > { %s1647_s22 = scalar_lea.vmem %s1646_s12, 5504  ;;  %p1648_p12 = scmp.lt.s32.totalorder %s2039_s2, %s1646_s12 }
  0x8a   : > { %p1643_p6 = pnand %p1641_p13, %p1627_p0  ;;  %p1649_p4 = scmp.lt.s32.totalorder %s1647_s22, %s1640_s8 }
  0x8c   : > { %p1644_p8 = pneg %p1643_p6  ;;  %p1650_p7 = por %p1649_p4, %p1648_p12 }
  0x8e   : > { %p1651_p3 = pnand %p1650_p7, %p1644_p8 }
  0x90   : > { %1654 = shalt.err (!%p1651_p3)
}
  0x91   : > { %s2953_s18 = smov 4   ;;  %s2954_s1 = smov 64  }
  0x92   : > { %1407 = dma.hbm_to_vmem [thread:$0]  (!%p2045_p10), %s2037_s26, 2752, %s2039_s2, %s2049_s27, %s2954_s1, %s2954_s1, %s2953_s18  }
  0x93   : > { %p2955_p0 = scmp.ne.s32.totalorder %s2945_s7, 0 }
  0x95   : > { %227 = sbr.rel (%p2955_p0) target bundleno = 667 (0x29b), region = 36 }
  0x9c   : > { %s229_s11 = sand.u32 1, %s1761_s19   ;;  %p2956_p1 = scmp.ne.s32.totalorder %s2940_s30, 0 }
  0x9d   : > { %s1375_s14 = smul.u32 172, %s229_s11  ;;  %s230_s13 = scalar_lea.sflag [#allocation3], %s229_s11 }
  0x9f   : > { %s233_s29 = scalar_lea.vmem [#allocation2], %s1375_s14 }
  0xa0   : > { %1728 = dma.done.wait (%p2956_p1), %s230_s13, 2752  }
  0xa1   : > { %1730 = vsyncadd (%p2956_p1), %s230_s13, 4294964544  ;;  %p2957_p11 = scmp.ne.s32.totalorder %s2939_s28, 0 }
  0xa3   : > { %1732 = dma.done.wait (%p2957_p11), [#allocation6], 336  }
  0xa4   : > { %1734 = vsyncadd (%p2957_p11), [#allocation6], 4294966960 }
  0xa5   : > { %1736 = dma.done.wait (%p2957_p11), [#allocation9], 16  }
  0xa6   : > { %1738 = vsyncadd (%p2957_p11), [#allocation9], 4294967280  ;;  %s272_s2 = smul.u32 144, %s1769_s21  ;;  %v2920_v0 = vmov 0.0   ;;  %vm443_vm0 = vcmask 1046528   ;;  %vm577_vm1 = vcmask 1045504  }
  0xa7   : > { %1325 = vmatprep.subr.bf16.mxu0 %v2920_v0  ;;  %1367 = vmatprep.subr.bf16.mxu1 %v2920_v0  ;;  %vm348_vm2 = vsmask.f32 7424  ;;  %vm711_vm3 = vcmask 1044480   ;;  %vm509_vm4 = vsmask.f32 6400  ;;  %s1794_s28 = smov 12  }
  0xa8   : > { %s273_s7 = sshra.s32 %s272_s2, 3  ;;  %s1795_s30 = smov 8   ;;  %vm643_vm5 = vsmask.f32 5376  ;;  %v1537_v48 = vld [vmem:[#allocation5] sm:$0xff]   ;;  %v1538_v60 = vld [vmem:[#allocation5 + $0x8] sm:$0xff]  }
  0xa9   : > { %s1281_s26 = sshll.u32 %s273_s7, 2  ;;  %s1796_s27 = smov 24   ;;  %1326 = vmatpush3.bf16.msra.mxu0 %v1537_v48  ;;  %1370 = vmatpush3.bf16.msra.mxu1 %v1537_v48  ;;  %vm940_vm6 = vcmask 1041408   ;;  %vm1802_vm7 = vmmov 0   ;;  %vm749_vm8 = vcmask 31744   ;;  %vm768_vm9 = vcmask 64512  }
  0xaa   : > { %s2096_s10 = scalar_lea.vmem %s233_s29, %s1281_s26 [#allocation2]  ;;  %s1797_s8 = smov 20   ;;  %1327 = vmatprep.subr.bf16.mxu0 %v2920_v0  ;;  %1368 = vmatprep.subr.bf16.mxu1 %v2920_v0  ;;  %vm787_vm10 = vcmask 97280   ;;  %vm806_vm11 = vcmask 130048   ;;  %vm825_vm12 = vcmask 162816   ;;  %vm844_vm13 = vcmask 195584  }
  0xab   : > { %v2101_v1 = vld [vmem:[%s2096_s10 + $0x8] sm:$0xff]   ;;  %v2104_v2 = vld [vmem:[%s2096_s10 + $0x10] sm:$0xff]   ;;  %v2107_v3 = vld [vmem:[%s2096_s10] sm:$0xff]   ;;  %s1798_s9 = smov 32   ;;  %s1799_s12 = smov 4   ;;  %vm863_vm14 = vcmask 228352  }
  0xac   : > { %2958 = vst [vmem:[#allocation19_spill] sm:$0xff] %v2101_v1  ;;  %2959 = vst [vmem:[#allocation20_spill] sm:$0xff] %v2104_v2  ;;  %v445_v4 = vrot.slane %v2101_v1, 1  ;;  %v447_v5 = vrot.slane %v2104_v2, 1  ;;  %v444_v6 = vrot.slane %v2107_v3, 1  ;;  %v2113_v7 = vld [vmem:[%s2096_s10 + $0x18] sm:$0xff]  }
  0xad   : > { %2960 = vst [vmem:[#allocation21_spill] sm:$0xff] %v2107_v3  ;;  %v579_v8 = vrot.slane %v2104_v2, 2  ;;  %v578_v9 = vrot.slane %v2101_v1, 2  ;;  %v712_v10 = vrot.slane %v2104_v2, 3  ;;  %v350_v12 = vshrl.u32 %v2107_v3, 16  ;;  %v2127_v15 = vld [vmem:[%s2096_s10 + $0x28] sm:$0xff]   ;;  %1328 = vmatpush3.bf16.msra.mxu0 %v1538_v60  ;;  %1371 = vmatpush3.bf16.msra.mxu1 %v1538_v60 }
  0xae   : > { %v2121_v11 = vsel %vm443_vm0, %v445_v4, %v447_v5  ;;  %v352_v13 = vshll.u32 %v2107_v3, 16  ;;  %v357_v14 = vshll.u32 %v2101_v1, 16  ;;  %v446_v16 = vsel %vm443_vm0, %v444_v6, %v445_v4  ;;  %v2156_v32 = vld [vmem:[%s2096_s10 + $0x30] sm:$0xff]   ;;  %v2183_v47 = vld [vmem:[%s2096_s10 + $0x38] sm:$0xff]   ;;  %v2209_v59 = vld [vmem:[%s2096_s10 + $0x40] sm:$0xff]   ;;  %s1800_s22 = smov 16   ;;  %1329 = vmatprep.subr.bf16.mxu0 %v2920_v0  ;;  %1369 = vmatprep.subr.bf16.mxu1 %v2920_v0 }
  0xaf   : > { %491 = vrot.lane.b32.xlu1 %v2121_v11, %s1794_s28  ;;  %v581_v17 = vrot.slane %v2113_v7, 2  ;;  %v580_v18 = vsel %vm577_vm1, %v578_v9, %v579_v8  ;;  %v2923_v19 = vrot.slane %v2113_v7, 3  ;;  %463 = vrot.lane.b32.xlu0 %v446_v16, %s1795_s30  ;;  %v361_v22 = vshrl.u32 %v2101_v1, 16  ;;  %s1801_s18 = smov 28   ;;  %v2225_v9 = vld [vmem:[%s2096_s10 + $0x20] sm:$0xff]   ;;  %s267_s1 = sand.u32 1, %s1749_s16  }
  0xb0   : > { %v354_v20 = vrot.slane %v352_v13, 1  ;;  %v359_v21 = vrot.slane %v357_v14, 1  ;;  %v2138_v23 = vshll.u32 %v2104_v2, 16  ;;  %v2149_v26 = vshrl.u32 %v2104_v2, 16  ;;  %s1376_s11 = smul.u32 144, %s267_s1  ;;  %s2993_s13 = sld [smem:[#allocation16_spill]] }
  0xb1   : > { %v2143_v24 = vsel %vm577_vm1, %v579_v8, %v581_v17  ;;  %v714_v25 = vsel %vm711_vm3, %v712_v10, %v2923_v19  ;;  %v511_v27 = vrot.slane %v357_v14, 2  ;;  %v510_v29 = vrot.slane %v361_v22, 1  ;;  %s1143_s29 = smul.u32 18, %s1769_s21  ;;  %s2994_s26 = sld [smem:[#allocation17_spill]] }
  0xb2   : > { %v355_v28 = vor.u32 %v354_v20, %v350_v12  ;;  %v514_v30 = vrot.slane %v2138_v23, 2  ;;  %v2153_v31 = vshll.u32 %v2113_v7, 16  ;;  %v513_v33 = vrot.slane %v2149_v26, 1  ;;  %s2774_s14 = scalar_lea.vmem [#allocation10], %s1376_s11 }
  0xb3   : > { %625 = vrot.lane.b32.xlu1 %v2143_v24, %s1796_s27  ;;  %v2162_v34 = vshrl.u32 %v2113_v7, 16  ;;  %v644_v35 = vrot.slane %v2149_v26, 2  ;;  %v645_v36 = vrot.slane %v2138_v23, 3  ;;  %597 = vrot.lane.b32.xlu0 %v580_v18, %s1797_s8  ;;  %v512_v38 = vor.u32 %v511_v27, %v510_v29  ;;  %s1151_s21 = sshll.u32 %s2774_s14, 4  ;;  %s2826_s21 = int_to_ptr.vmem [resolvable:$true] %s1151_s21 }
  0xb4   : > { %v360_v37 = vsel %vm348_vm2, %v355_v28, %v359_v21  ;;  %v648_v39 = vrot.slane %v2153_v31, 3  ;;  %v2170_v40 = vshll.u32 %v2127_v15, 16  ;;  %v2172_v41 = vor.u32 %v514_v30, %v513_v33 }
  0xb5   : > { %v646_v42 = vor.u32 %v645_v36, %v644_v35  ;;  %v647_v43 = vrot.slane %v2162_v34, 2  ;;  %v2176_v44 = vshrl.u32 %v2127_v15, 16  ;;  %v2180_v46 = vshll.u32 %v2156_v32, 16 }
  0xb6   : > { %v2922_v45 = vrot.slane %v2170_v40, 1  ;;  %v363_v50 = vor.u32 %v361_v22, %v359_v21  ;;  %v516_v51 = vsel %vm509_vm4, %v512_v38, %v2172_v41  ;;  %v367_v54 = vrot.slane %v2138_v23, 1  ;;  %s1377_s2 = smul.u32 36, %s2993_s13 }
  0xb7   : > { %731 = vrot.lane.b32.xlu1 %v714_v25, %s1798_s9  ;;  %v2186_v49 = vor.u32 %v648_v39, %v647_v43  ;;  %425 = vrot.lane.b32.xlu0 %v360_v37, %s1799_s12  ;;  %v399_v53 = vrot.slane %v2180_v46, 1  ;;  %v2199_v56 = vshrl.u32 %v2156_v32, 16  ;;  %v2203_v57 = vshll.u32 %v2183_v47, 16  ;;  %p2996_p2 = scmp.ne.s32.totalorder %s2994_s26, 0 }
  0xb8   : > { %v395_v52 = vor.u32 %v2176_v44, %v2922_v45  ;;  %v2206_v58 = vshrl.u32 %v2183_v47, 16  ;;  %v453_v61 = vrot.slane %v2127_v15, 1  ;;  %v455_v62 = vrot.slane %v2156_v32, 1  ;;  %s1148_s7 = sadd.s32 %s1377_s2, %s1143_s29 }
  0xb9   : > { %v650_v55 = vsel %vm643_vm5, %v646_v42, %v2186_v49  ;;  %v368_v4 = vsel %vm348_vm2, %v363_v50, %v367_v54  ;;  %v529_v6 = vrot.slane %v2199_v56, 1  ;;  %v530_v8 = vrot.slane %v2180_v46, 2 }
  0xba   : > { %v400_v63 = vsel %vm348_vm2, %v395_v52, %v399_v53  ;;  %v533_v10 = vrot.slane %v2206_v58, 1  ;;  %v534_v12 = vrot.slane %v2203_v57, 2  ;;  %v517_v13 = vrot.slane %v2162_v34, 1 }
  0xbb   : > { %559 = vrot.lane.b32.xlu1 %v516_v51, %s1800_s22  ;;  %693 = vrot.lane.b32.xlu0 %v650_v55, %s1801_s18  ;;  %v518_v14 = vrot.slane %v2153_v31, 2  ;;  %v2233_v16 = vshll.u32 %v2209_v59, 16  ;;  %v2236_v18 = vshrl.u32 %v2209_v59, 16  ;;  %v2243_v20 = vsel %vm443_vm0, %v453_v61, %v455_v62 }
  0xbc   : > { %2961 = vst [vmem:[#allocation22_spill] sm:$0xff] %v2243_v20  ;;  %v2919_v21 = vrot.slane %v2183_v47, 1  ;;  %v2918_v22 = vrot.slane %v2113_v7, 1  ;;  %v2927_v25 = vrot.slane %v2156_v32, 2  ;;  %v2249_v27 = vor.u32 %v530_v8, %v529_v6 }
  0xbd   : > { %v589_v28 = vrot.slane %v2183_v47, 2  ;;  %v591_v29 = vrot.slane %v2209_v59, 2  ;;  %v2917_v30 = vrot.slane %v2225_v9, 2  ;;  %v2254_v33 = vor.u32 %v534_v12, %v533_v10 }
  0xbe   : > { %v2256_v35 = vor.u32 %v518_v14, %v517_v13  ;;  %v2259_v36 = vshll.u32 %v2225_v9, 16  ;;  %v2262_v37 = vshrl.u32 %v2225_v9, 16  ;;  %v663_v38 = vrot.slane %v2206_v58, 2 }
  0xbf   : > { %435 = vrot.lane.b32.xlu1 %v400_v63, %s1799_s12  ;;  %427 = vrot.lane.b32.xlu0 %v368_v4, %s1799_s12  ;;  %v664_v39 = vrot.slane %v2203_v57, 3  ;;  %v667_v42 = vrot.slane %v2236_v18, 2  ;;  %v668_v43 = vrot.slane %v2233_v16, 3  ;;  %v2275_v48 = vsel %vm443_vm0, %v455_v62, %v2919_v21  ;;  %v2302_v62 = vld [vmem:[%s2096_s10 + $0x48] sm:$0xf] }
  0xc0   : > { %v651_v50 = vrot.slane %v2262_v37, 2  ;;  %v652_v51 = vrot.slane %v2259_v36, 3  ;;  %v2284_v52 = vsel %vm443_vm0, %v447_v5, %v2918_v22  ;;  %v2292_v55 = vsel %vm577_vm1, %v589_v28, %v591_v29  ;;  %v296_v63 = vld [vmem:[%s2096_s10 + $0x4c] sm:$0xf] }
  0xc1   : > { %v2299_v60 = vsel %vm577_vm1, %v581_v17, %v2917_v30  ;;  %v536_v5 = vsel %vm509_vm4, %v2249_v27, %v2254_v33  ;;  %v520_v4 = vsel %vm509_vm4, %v2172_v41, %v2256_v35  ;;  %v2311_v6 = vor.u32 %v664_v39, %v663_v38 }
  0xc2   : > { %v2313_v8 = vor.u32 %v668_v43, %v667_v42  ;;  %v2924_v10 = vrot.slane %v2209_v59, 3  ;;  %v2323_v13 = vor.u32 %v2199_v56, %v399_v53  ;;  %v2327_v41 = vor.u32 %v652_v51, %v651_v50 }
  0xc3   : > { %473 = vrot.lane.b32.xlu1 %v2243_v20, %s1795_s30  ;;  %465 = vrot.lane.b32.xlu0 %v2121_v11, %s1795_s30  ;;  %v2289_v11 = vsel %vm577_vm1, %v2927_v25, %v589_v28  ;;  %v537_v14 = vrot.slane %v2236_v18, 1  ;;  %v538_v28 = vrot.slane %v2233_v16, 2  ;;  %v2332_v38 = vcombine.low %v2302_v62, %v296_v63 }
  0xc4   : > { %2962 = vst [vmem:[#allocation23_spill] sm:$0xff] %v2289_v11  ;;  %v2338_v42 = vor.u32 %v2149_v26, %v367_v54  ;;  %v521_v53 = vrot.slane %v2262_v37, 1  ;;  %v522_v43 = vrot.slane %v2259_v36, 2  ;;  %v670_v50 = vsel %vm643_vm5, %v2311_v6, %v2313_v8 }
  0xc5   : > { %v2926_v51 = vrot.slane %v2153_v31, 1  ;;  %v2347_v63 = vrot.slane %v2209_v59, 1  ;;  %v2350_v30 = vrot.slane %v2332_v38, 2  ;;  %v2925_v23 = vrot.slane %v2225_v9, 1 }
  0xc6   : > { %v542_v26 = vshrl.u32 %v2332_v38, 16  ;;  %v545_v54 = vshll.u32 %v2332_v38, 16  ;;  %v725_v22 = vrot.slane %v2332_v38, 3  ;;  %v654_v21 = vsel %vm643_vm5, %v2186_v49, %v2327_v41 }
  0xc7   : > { %501 = vrot.lane.b32.xlu1 %v2275_v48, %s1794_s28  ;;  %493 = vrot.lane.b32.xlu0 %v2284_v52, %s1794_s28  ;;  %v2361_v0 = vor.u32 %v538_v28, %v537_v14  ;;  %v2368_v45 = vor.u32 %v522_v43, %v521_v53  ;;  %v655_v19 = vrot.slane %v2176_v44, 2  ;;  %v656_v12 = vrot.slane %v2170_v40, 3  ;;  %v297_v53 = vld [vmem:[%s2096_s10 + $0x50] sm:$0xf]  ;;  %v298_v43 = vld [vmem:[%s2096_s10 + $0x54] sm:$0xf] }
  0xc8   : > { %v379_v49 = vor.u32 %v2162_v34, %v2926_v51  ;;  %v2929_v14 = vrot.slane %v2332_v38, 1  ;;  %v2387_v28 = vsel %vm443_vm0, %v2925_v23, %v453_v61  ;;  %v671_v17 = vrot.slane %v542_v26, 2 }
  0xc9   : > { %v544_v39 = vrot.slane %v542_v26, 1  ;;  %v547_v34 = vrot.slane %v545_v54, 2  ;;  %v525_v23 = vrot.slane %v2176_v44, 1  ;;  %v526_v51 = vrot.slane %v2170_v40, 2 }
  0xca   : > { %v2402_v61 = vsel %vm443_vm0, %v2347_v63, %v2929_v14  ;;  %v2406_v25 = vor.u32 %v656_v12, %v655_v19  ;;  %v659_v44 = vrot.slane %v2199_v56, 2  ;;  %v1291_v14 = vcombine.low %v2302_v62, %v2302_v62 }
  0xcb   : > { %569 = vrot.lane.b32.xlu1 %v536_v5, %s1800_s22  ;;  %561 = vrot.lane.b32.xlu0 %v520_v4, %s1800_s22  ;;  %v2365_v5 = vsel %vm577_vm1, %v591_v29, %v2350_v30  ;;  %v2375_v4 = vsel %vm711_vm3, %v2924_v10, %v725_v22  ;;  %v383_v29 = vrot.slane %v2259_v36, 1  ;;  %v672_v10 = vrot.slane %v545_v54, 3 }
  0xcc   : > { %v2408_v26 = vor.u32 %v547_v34, %v544_v39  ;;  %v2410_v54 = vcombine.low %v297_v53, %v298_v43  ;;  %v527_v1 = vor.u32 %v526_v51, %v525_v23  ;;  %v461_v3 = vrot.slane %v1291_v14, 1 }
  0xcd   : > { %v2396_v36 = vsel %vm348_vm2, %v379_v49, %v383_v29  ;;  %v2964_v49 = vrot.slane %v2127_v15, 2  ;;  %v2434_v56 = vor.u32 %v672_v10, %v671_v17  ;;  %v1293_v62 = vcombine.low %v297_v53, %v297_v53 }
  0xce   : > { %v2427_v19 = vsel %vm509_vm4, %v2361_v0, %v2408_v26  ;;  %v621_v12 = vrot.slane %v2410_v54, 2  ;;  %v676_v39 = vshrl.u32 %v2410_v54, 16  ;;  %v679_v43 = vshll.u32 %v2410_v54, 16 }
  0xcf   : > { %607 = vrot.lane.b32.xlu1 %v2289_v11, %s1797_s8  ;;  %599 = vrot.lane.b32.xlu0 %v2143_v24, %s1797_s8  ;;  %v2963_v24 = vrot.slane %v2156_v32, 2  ;;  %v660_v11 = vrot.slane %v2180_v46, 3  ;;  %v2438_v46 = vsel %vm509_vm4, %v2368_v45, %v527_v1  ;;  %v727_v23 = vrot.slane %v2410_v54, 3 }
  0xd0   : > { %v2443_v34 = vsel %vm577_vm1, %v2350_v30, %v621_v12  ;;  %v2968_v20 = vrot.slane %v2209_v59, 3  ;;  %vm882_vm15 = vcmask 261120  }
  0xd1   : > { %v2417_v2 = vsel %vm577_vm1, %v2964_v49, %v2963_v24  ;;  %v661_v51 = vor.u32 %v660_v11, %v659_v44  ;;  %v678_v24 = vrot.slane %v676_v39, 2  ;;  %v681_v49 = vrot.slane %v679_v43, 3 }
  0xd2   : > { %v2452_v10 = vsel %vm711_vm3, %v725_v22, %v727_v23  ;;  %v2967_v11 = vrot.slane %v2233_v16, 1  ;;  %v387_v44 = vor.u32 %v2262_v37, %v383_v29  ;;  %v421_v43 = vshll.u32 %v1291_v14, 16  ;;  %v1539_v14 = vld [vmem:[#allocation5 + $0x10] ss:$0 sps:$4 sm:$0x33]  }
  0xd3   : > { %635 = vrot.lane.b32.xlu1 %v2292_v55, %s1796_s27  ;;  %627 = vrot.lane.b32.xlu0 %v2299_v60, %s1796_s27  ;;  %v2449_v17 = vsel %vm643_vm5, %v2406_v25, %v661_v51  ;;  %2966 = vst [vmem:[#allocation25_spill] sm:$0xff] %v2452_v10  ;;  %v682_v39 = vor.u32 %v681_v49, %v678_v24  ;;  %v2969_v22 = vrot.slane %v2183_v47, 3  ;;  %v489_v49 = vrot.slane %v1293_v62, 1 }
  0xd4   : > { %2965 = vst [vmem:[#allocation24_spill] sm:$0xff] %v2449_v17  ;;  %v419_v54 = vor.u32 %v2236_v18, %v2967_v11  ;;  %v2970_v17 = vrot.slane %v2225_v9, 3  ;;  %v2971_v18 = vrot.slane %v2113_v7, 3  ;;  %v2485_v24 = vsel %vm443_vm0, %v2347_v63, %v461_v3 }
  0xd5   : > { %v724_v10 = vsel %vm711_vm3, %v2969_v22, %v2968_v20  ;;  %v2481_v53 = vsel %vm643_vm5, %v2434_v56, %v682_v39  ;;  %v423_v20 = vrot.slane %v421_v43, 1  ;;  %v2975_v3 = vrot.slane %v2332_v38, 1 }
  0xd6   : > { %v716_v37 = vsel %vm711_vm3, %v2971_v18, %v2970_v17  ;;  %v1540_v17 = vld [vmem:[%s2096_s10 + $0x58] ss:$0 sps:$4 sm:$0x77]   ;;  %s1310_s10 = sshll.u32 %s1148_s7, 7 }
  0xd7   : > { %703 = vrot.lane.b32.xlu1 %v670_v50, %s1801_s18  ;;  %695 = vrot.lane.b32.xlu0 %v654_v21, %s1801_s18  ;;  %v2972_v50 = vrot.slane %v2170_v40, 1  ;;  %v2477_v21 = vsel %vm509_vm4, %v527_v1, %v2249_v27  ;;  %v2973_v40 = vrot.slane %v2203_v57, 1  ;;  %v554_v1 = vshll.u32 %v1293_v62, 16 }
  0xd8   : > { %v2974_v27 = vrot.slane %v2153_v31, 1  ;;  %v2498_v22 = vsel %vm348_vm2, %v419_v54, %v423_v20  ;;  %v2503_v18 = vsel %vm443_vm0, %v2975_v3, %v489_v49  ;;  %v2976_v54 = vmov 0.0  }
  0xd9   : > { %v2473_v29 = vsel %vm348_vm2, %v387_v44, %v2972_v50  ;;  %v408_v11 = vsel %vm348_vm2, %v2323_v13, %v2973_v40  ;;  %v551_v44 = vshrl.u32 %v1293_v62, 16  ;;  %v595_v50 = vrot.slane %v1293_v62, 2  ;;  %1331 = vmatprep.mubr.msk.bf16.mxu0 %vm1802_vm7, %v2976_v54  ;;  %1351 = vmatprep.mubr.msk.bf16.mxu1 %vm1802_vm7, %v2976_v54 }
  0xda   : > { %v376_v43 = vsel %vm348_vm2, %v2338_v42, %v2974_v27  ;;  %v556_v40 = vrot.slane %v554_v1, 2  ;;  %v942_v42 = vsel %vm940_vm6, %v1539_v14, 0  ;;  %v623_v38 = vrot.slane %v1540_v17, 2 }
  0xdb   : > { %741 = vrot.lane.b32.xlu1 %v724_v10, %s1798_s9  ;;  %733 = vrot.lane.b32.xlu0 %v716_v37, %s1798_s9  ;;  %v553_v13 = vrot.slane %v551_v44, 1  ;;  %v719_v10 = vrot.slane %v2156_v32, 3  ;;  %v2509_v31 = vsel %vm577_vm1, %v2350_v30, %v595_v50  ;;  %v685_v37 = vshrl.u32 %v1540_v17, 16 }
  0xdc   : > { %1330 = vmatpush3.bf16.msra.mxu0 %v942_v42  ;;  %v688_v20 = vshll.u32 %v1540_v17, 16  ;;  %1372 = vmatpush3.bf16.msra.mxu1 %v942_v42  ;;  %v2517_v49 = vsel %vm577_vm1, %v621_v12, %v623_v38  ;;  %v2521_v30 = vsel %vm643_vm5, %v661_v51, %v2311_v6  ;;  %v729_v14 = vrot.slane %v1540_v17, 3 }
  0xdd   : > { %v557_v62 = vor.u32 %v556_v40, %v553_v13  ;;  %v2977_v44 = vrot.slane %v2183_v47, 3  ;;  %v687_v12 = vrot.slane %v685_v37, 2  ;;  %v2978_v51 = vrot.slane %v2183_v47, 1 }
  0xde   : > { %v690_v27 = vrot.slane %v688_v20, 3  ;;  %v2536_v3 = vsel %vm711_vm3, %v727_v23, %v729_v14  ;;  %v2980_v23 = vrot.slane %v2113_v7, 1  ;;  %v2984_v13 = vrot.slane %v2225_v9, 3 }
  0xdf   : > { %437 = vrot.lane.b32.xlu1 %v408_v11, %s1799_s12  ;;  %v2528_v1 = vsel %vm711_vm3, %v719_v10, %v2977_v44  ;;  %429 = vrot.lane.b32.xlu0 %v376_v43, %s1799_s12  ;;  %v2533_v11 = vsel %vm509_vm4, %v2408_v26, %v557_v62  ;;  %v460_v17 = vsel %vm443_vm0, %v2978_v51, %v2347_v63  ;;  %v2979_v43 = vrot.slane %v2225_v9, 1 }
  0xe0   : > { %v691_v6 = vor.u32 %v690_v27, %v687_v12  ;;  %v2981_v63 = vrot.slane %v2127_v15, 2 }
  0xe1   : > { %v452_v50 = vsel %vm443_vm0, %v2980_v23, %v2979_v43  ;;  %vm921_vm0 = vcmask 293888  }
  0xe2   : > { %v2547_v26 = vsel %vm643_vm5, %v682_v39, %v691_v6  ;;  %v2982_v39 = vrot.slane %v2225_v9, 2 }
  0xe3   : > { %475 = vrot.lane.b32.xlu1 %v2275_v48, %s1795_s30  ;;  %467 = vrot.lane.b32.xlu0 %v2284_v52, %s1795_s30  ;;  %v540_v48 = vsel %vm509_vm4, %v2254_v33, %v2361_v0  ;;  %v524_v52 = vsel %vm509_vm4, %v2256_v35, %v2368_v45  ;;  %v674_v45 = vsel %vm643_vm5, %v2313_v8, %v2434_v56  ;;  %v717_v35 = vrot.slane %v2127_v15, 3 }
  0xe4   : > { %v586_v0 = vsel %vm577_vm1, %v2982_v39, %v2981_v63  ;;  %v658_v33 = vsel %vm643_vm5, %v2327_v41, %v2406_v25  ;;  %v2985_v25 = vrot.slane %v2233_v16, 1  ;;  %v2987_v16 = vld [vmem:[#allocation25_spill] sm:$0xff] }
  0xe5   : > { %v718_v40 = vsel %vm711_vm3, %v2984_v13, %v717_v35 }
  0xe7   : > { %503 = vrot.lane.b32.xlu1 %v460_v17, %s1794_s28  ;;  %495 = vrot.lane.b32.xlu0 %v452_v50, %s1794_s28 }
  0xeb   : > { %571 = vrot.lane.b32.xlu1 %v540_v48, %s1800_s22  ;;  %563 = vrot.lane.b32.xlu0 %v524_v52, %s1800_s22 }
  0xef   : > { %609 = vrot.lane.b32.xlu1 %v2292_v55, %s1797_s8  ;;  %601 = vrot.lane.b32.xlu0 %v2299_v60, %s1797_s8  ;;  %v2983_v55 = vrot.slane %v2203_v57, 1  ;;  %v2986_v57 = vld [vmem:[#allocation24_spill] sm:$0xff] }
  0xf1   : > { %v411_v60 = vor.u32 %v2206_v58, %v2983_v55  ;;  %v720_v58 = vsel %vm711_vm3, %v717_v35, %v719_v10 }
  0xf3   : > { %637 = vrot.lane.b32.xlu1 %v2365_v5, %s1796_s27  ;;  %629 = vrot.lane.b32.xlu0 %v586_v0, %s1796_s27  ;;  %v416_v8 = vsel %vm348_vm2, %v411_v60, %v2985_v25 }
  0xf7   : > { %705 = vrot.lane.b32.xlu1 %v674_v45, %s1801_s18  ;;  %697 = vrot.lane.b32.xlu0 %v658_v33, %s1801_s18 }
  0xfb   : > { %743 = vrot.lane.b32.xlu1 %v2375_v4, %s1798_s9  ;;  %735 = vrot.lane.b32.xlu0 %v718_v40, %s1798_s9 }
  0xff   : > { %439 = vrot.lane.b32.xlu1 %v416_v8, %s1799_s12  ;;  %431 = vrot.lane.b32.xlu0 %v2396_v36, %s1799_s12 }
 0x103   : > { %477 = vrot.lane.b32.xlu1 %v460_v17, %s1795_s30  ;;  %469 = vrot.lane.b32.xlu0 %v452_v50, %s1795_s30  ;;  %v2991_v17 = vld [vmem:[#allocation19_spill] sm:$0xff] }
 0x107   : > { %505 = vrot.lane.b32.xlu1 %v2402_v61, %s1794_s28  ;;  %497 = vrot.lane.b32.xlu0 %v2387_v28, %s1794_s28  ;;  %v2988_v61 = vld [vmem:[#allocation22_spill] sm:$0xff] }
 0x10b   : > { %573 = vrot.lane.b32.xlu1 %v2427_v19, %s1800_s22  ;;  %565 = vrot.lane.b32.xlu0 %v2438_v46, %s1800_s22  ;;  %v2989_v46 = vld [vmem:[#allocation21_spill] sm:$0xff] }
 0x10f   : > { %611 = vrot.lane.b32.xlu1 %v2365_v5, %s1797_s8  ;;  %603 = vrot.lane.b32.xlu0 %v586_v0, %s1797_s8 }
 0x113   : > { %639 = vrot.lane.b32.xlu1 %v2443_v34, %s1796_s27  ;;  %631 = vrot.lane.b32.xlu0 %v2417_v2, %s1796_s27 }
 0x117   : > { %707 = vrot.lane.b32.xlu1 %v2481_v53, %s1801_s18  ;;  %699 = vrot.lane.b32.xlu0 %v2986_v57, %s1801_s18 }
 0x11b   : > { %745 = vrot.lane.b32.xlu1 %v2987_v16, %s1798_s9  ;;  %737 = vrot.lane.b32.xlu0 %v720_v58, %s1798_s9 }
 0x11f   : > { %441 = vrot.lane.b32.xlu1 %v2498_v22, %s1799_s12  ;;  %433 = vrot.lane.b32.xlu0 %v2473_v29, %s1799_s12  ;;  %s2838_s12 = scalar_lea.sflag [#allocation4], %s267_s1 }
 0x121   : > { %v492_v41 = vpop.permute.xlu1 %491  ;;  %v464_v5 = vpop.permute.xlu0 %463 }
 0x123   : > { %479 = vrot.lane.b32.xlu1 %v2485_v24, %s1795_s30  ;;  %471 = vrot.lane.b32.xlu0 %v2387_v28, %s1795_s30 }
 0x125   : > { %v626_v4 = vpop.permute.xlu1 %625  ;;  %v598_v36 = vpop.permute.xlu0 %597 }
 0x127   : > { %507 = vrot.lane.b32.xlu1 %v2503_v18, %s1794_s28  ;;  %499 = vrot.lane.b32.xlu0 %v2988_v61, %s1794_s28 }
 0x129   : > { %v732_v19 = vpop.permute.xlu1 %731  ;;  %v426_v56 = vpop.permute.xlu0 %425 }
 0x12a   : > { %v751_v34 = vsel %vm749_vm8, %v2989_v46, %v426_v56  ;;  %v2992_v46 = vld [vmem:[#allocation20_spill] sm:$0xff] }
 0x12b   : > { %575 = vrot.lane.b32.xlu1 %v2533_v11, %s1800_s22  ;;  %v770_v28 = vsel %vm768_vm9, %v751_v34, %v464_v5  ;;  %567 = vrot.lane.b32.xlu0 %v2477_v21, %s1800_s22  ;;  %s1655_s22 = scalar_lea.vmem %s2826_s21, 2304 }
 0x12c   : > { %v789_v53 = vsel %vm787_vm10, %v770_v28, %v492_v41  ;;  %p1656_p10 = scmp.ne.s32.totalorder %s2826_s21, %s1655_s22 }
 0x12d   : > { %v560_v29 = vpop.permute.xlu1 %559  ;;  %v694_v22 = vpop.permute.xlu0 %693 }
 0x12e   : > { %v808_v24 = vsel %vm806_vm11, %v789_v53, %v560_v29  ;;  %p1657_p9 = pnand %p1656_p10, %p2996_p2 }
 0x12f   : > { %v827_v18 = vsel %vm825_vm12, %v808_v24, %v598_v36  ;;  %613 = vrot.lane.b32.xlu1 %v2509_v31, %s1797_s8  ;;  %605 = vrot.lane.b32.xlu0 %v2417_v2, %s1797_s8  ;;  %v2990_v31 = vld [vmem:[#allocation23_spill] sm:$0xff]  ;;  %s2995_s8 = sld [smem:[#allocation28_spill]] }
 0x130   : > { %v846_v10 = vsel %vm844_vm13, %v827_v18, %v626_v4  ;;  %p1658_p5 = pneg %p1657_p9 }
 0x131   : > { %v865_v21 = vsel %vm863_vm14, %v846_v10, %v694_v22  ;;  %v436_v42 = vpop.permute.xlu1 %435  ;;  %v428_v38 = vpop.permute.xlu0 %427 }
 0x132   : > { %v884_v62 = vsel %vm882_vm15, %v865_v21, %v732_v19  ;;  %v761_v51 = vsel %vm749_vm8, %v2127_v15, %v436_v42 }
 0x133   : > { %641 = vrot.lane.b32.xlu1 %v2517_v49, %s1796_s27  ;;  %1332 = vmatmul.mubr.msk.bf16.vlgmr.msra.gmra.mrb[0].mxu0 %vm921_vm0, %v884_v62 }
 0x134   : > { %633 = vrot.lane.b32.xlu0 %v2990_v31, %s1796_s27  ;;  %1335 = vmatprep.mubr.msk.bf16.mxu0 %vm1802_vm7, %v2976_v54 }
 0x135   : > { %v474_v37 = vpop.permute.xlu1 %473  ;;  %v466_v2 = vpop.permute.xlu0 %465 }
 0x137   : > { %709 = vrot.lane.b32.xlu1 %v2547_v26, %s1801_s18  ;;  %v780_v26 = vsel %vm768_vm9, %v761_v51, %v474_v37 }
 0x138   : > { %701 = vrot.lane.b32.xlu0 %v2521_v30, %s1801_s18  ;;  %v753_v30 = vsel %vm749_vm8, %v2991_v17, %v428_v38  ;;  %s1803_s18 = smov [#allocation10]  }
 0x139   : > { %v502_v20 = vpop.permute.xlu1 %501  ;;  %v494_v14 = vpop.permute.xlu0 %493  ;;  %v772_v43 = vsel %vm768_vm9, %v753_v30, %v466_v2  ;;  %s1659_s11 = sshll.u32 %s1803_s18, 4  ;;  %s1660_s11 = int_to_ptr.vmem [resolvable:$false] %s1659_s11 }
 0x13a   : > { %s1661_s13 = scalar_lea.vmem %s1660_s11, 4608  ;;  %p1662_p13 = scmp.lt.s32.totalorder %s2826_s21, %s1660_s11 }
 0x13b   : > { %747 = vrot.lane.b32.xlu1 %v2536_v3, %s1798_s9  ;;  %v799_v3 = vsel %vm787_vm10, %v780_v26, %v502_v20  ;;  %p1663_p6 = scmp.lt.s32.totalorder %s1661_s13, %s1655_s22 }
 0x13c   : > { %739 = vrot.lane.b32.xlu0 %v2528_v1, %s1798_s9  ;;  %v791_v1 = vsel %vm787_vm10, %v772_v43, %v494_v14  ;;  %s2832_s9 = scalar_lea.hbm %s2995_s8, %s1310_s10 }
 0x13d   : > { %v570_v49 = vpop.permute.xlu1 %569  ;;  %v562_v44 = vpop.permute.xlu0 %561  ;;  %p1664_p8 = por %p1663_p6, %p1662_p13 }
 0x13e   : > { %v818_v50 = vsel %vm806_vm11, %v799_v3, %v570_v49  ;;  %v810_v52 = vsel %vm806_vm11, %v791_v1, %v562_v44 }
 0x13f   : > { %p1665_p12 = pnand %p1664_p8, %p1658_p5 }
 0x141   : > { %v608_v11 = vpop.permute.xlu1 %607  ;;  %v600_v12 = vpop.permute.xlu0 %599 }
 0x142   : > { %v837_v63 = vsel %vm825_vm12, %v818_v50, %v608_v11  ;;  %v829_v15 = vsel %vm825_vm12, %v810_v52, %v600_v12 }
 0x145   : > { %v636_v27 = vpop.permute.xlu1 %635  ;;  %v628_v6 = vpop.permute.xlu0 %627 }
 0x146   : > { %v856_v39 = vsel %vm844_vm13, %v837_v63, %v636_v27  ;;  %v848_v0 = vsel %vm844_vm13, %v829_v15, %v628_v6 }
 0x149   : > { %v704_v23 = vpop.permute.xlu1 %703  ;;  %v696_v48 = vpop.permute.xlu0 %695 }
 0x14a   : > { %v875_v45 = vsel %vm863_vm14, %v856_v39, %v704_v23  ;;  %v867_v35 = vsel %vm863_vm14, %v848_v0, %v696_v48 }
 0x14d   : > { %v742_v33 = vpop.permute.xlu1 %741  ;;  %v734_v60 = vpop.permute.xlu0 %733 }
 0x14e   : > { %v894_v55 = vsel %vm882_vm15, %v875_v45, %v742_v33  ;;  %v886_v13 = vsel %vm882_vm15, %v867_v35, %v734_v60 }
 0x14f   : > { %1352 = vmatmul.mubr.msk.bf16.vlgmr.msra.gmra.mrb[0].mxu1 %vm921_vm0, %v894_v55  ;;  %1336 = vmatmul.mubr.msk.bf16.gmra.mrb[4].mxu0 %vm921_vm0, %v886_v13 }
 0x150   : > { %1355 = vmatprep.mubr.msk.bf16.mxu1 %vm1802_vm7, %v2976_v54  ;;  %1339 = vmatprep.mubr.msk.bf16.mxu0 %vm1802_vm7, %v2976_v54 }
 0x151   : > { %v438_v40 = vpop.permute.xlu1 %437  ;;  %v430_v25 = vpop.permute.xlu0 %429 }
 0x152   : > { %v763_v56 = vsel %vm749_vm8, %v2156_v32, %v438_v40  ;;  %v755_v34 = vsel %vm749_vm8, %v2992_v46, %v430_v25 }
 0x155   : > { %v476_v8 = vpop.permute.xlu1 %475  ;;  %v468_v57 = vpop.permute.xlu0 %467 }
 0x156   : > { %v782_v28 = vsel %vm768_vm9, %v763_v56, %v476_v8  ;;  %v774_v29 = vsel %vm768_vm9, %v755_v34, %v468_v57 }
 0x159   : > { %v504_v58 = vpop.permute.xlu1 %503  ;;  %v496_v16 = vpop.permute.xlu0 %495 }
 0x15a   : > { %v801_v53 = vsel %vm787_vm10, %v782_v28, %v504_v58  ;;  %v793_v22 = vsel %vm787_vm10, %v774_v29, %v496_v16 }
 0x15d   : > { %v572_v41 = vpop.permute.xlu1 %571  ;;  %v564_v5 = vpop.permute.xlu0 %563 }
 0x15e   : > { %v820_v18 = vsel %vm806_vm11, %v801_v53, %v572_v41  ;;  %v812_v21 = vsel %vm806_vm11, %v793_v22, %v564_v5 }
 0x161   : > { %v610_v4 = vpop.permute.xlu1 %609  ;;  %v602_v36 = vpop.permute.xlu0 %601 }
 0x162   : > { %v839_v42 = vsel %vm825_vm12, %v820_v18, %v610_v4  ;;  %v831_v32 = vsel %vm825_vm12, %v812_v21, %v602_v36 }
 0x165   : > { %v638_v61 = vpop.permute.xlu1 %637  ;;  %v630_v19 = vpop.permute.xlu0 %629 }
 0x166   : > { %v858_v38 = vsel %vm844_vm13, %v839_v42, %v638_v61  ;;  %v850_v62 = vsel %vm844_vm13, %v831_v32, %v630_v19 }
 0x169   : > { %v706_v24 = vpop.permute.xlu1 %705  ;;  %v698_v10 = vpop.permute.xlu0 %697 }
 0x16a   : > { %v877_v31 = vsel %vm863_vm14, %v858_v38, %v706_v24  ;;  %v869_v2 = vsel %vm863_vm14, %v850_v62, %v698_v10 }
 0x16d   : > { %v744_v37 = vpop.permute.xlu1 %743  ;;  %v736_v14 = vpop.permute.xlu0 %735 }
 0x16e   : > { %v896_v20 = vsel %vm882_vm15, %v877_v31, %v744_v37  ;;  %v888_v49 = vsel %vm882_vm15, %v869_v2, %v736_v14 }
 0x16f   : > { %1356 = vmatmul.mubr.msk.bf16.gmra.mrb[4].mxu1 %vm921_vm0, %v896_v20  ;;  %1340 = vmatmul.mubr.msk.bf16.gmra.mrb[8].mxu0 %vm921_vm0, %v888_v49 }
 0x170   : > { %1359 = vmatprep.mubr.msk.bf16.mxu1 %vm1802_vm7, %v2976_v54  ;;  %1343 = vmatprep.mubr.msk.bf16.mxu0 %vm1802_vm7, %v2976_v54 }
 0x171   : > { %v440_v44 = vpop.permute.xlu1 %439  ;;  %v432_v11 = vpop.permute.xlu0 %431 }
 0x172   : > { %v765_v1 = vsel %vm749_vm8, %v2183_v47, %v440_v44  ;;  %v757_v50 = vsel %vm749_vm8, %v2113_v7, %v432_v11  ;;  %v2764_v44 = vld [vmem:[#allocation7] ss:$0 sm:$0xff] }
 0x175   : > { %v478_v12 = vpop.permute.xlu1 %477  ;;  %v470_v27 = vpop.permute.xlu0 %469 }
 0x176   : > { %v784_v48 = vsel %vm768_vm9, %v765_v1, %v478_v12  ;;  %v776_v52 = vsel %vm768_vm9, %v757_v50, %v470_v27  ;;  %v2768_v12 = vld [vmem:[#allocation8] ss:$0 sm:$0xff] }
 0x179   : > { %v506_v6 = vpop.permute.xlu1 %505  ;;  %v498_v51 = vpop.permute.xlu0 %497 }
 0x17a   : > { %v803_v63 = vsel %vm787_vm10, %v784_v48, %v506_v6  ;;  %v795_v39 = vsel %vm787_vm10, %v776_v52, %v498_v51 }
 0x17d   : > { %v574_v17 = vpop.permute.xlu1 %573  ;;  %v566_v30 = vpop.permute.xlu0 %565 }
 0x17e   : > { %v822_v0 = vsel %vm806_vm11, %v803_v63, %v574_v17  ;;  %v814_v33 = vsel %vm806_vm11, %v795_v39, %v566_v30 }
 0x181   : > { %v612_v26 = vpop.permute.xlu1 %611  ;;  %v604_v43 = vpop.permute.xlu0 %603 }
 0x182   : > { %v841_v35 = vsel %vm825_vm12, %v822_v0, %v612_v26  ;;  %v833_v47 = vsel %vm825_vm12, %v814_v33, %v604_v43 }
 0x185   : > { %v640_v3 = vpop.permute.xlu1 %639  ;;  %v632_v23 = vpop.permute.xlu0 %631 }
 0x186   : > { %v860_v7 = vsel %vm844_vm13, %v841_v35, %v640_v3  ;;  %v852_v55 = vsel %vm844_vm13, %v833_v47, %v632_v23 }
 0x189   : > { %v708_v15 = vpop.permute.xlu1 %707  ;;  %v700_v45 = vpop.permute.xlu0 %699 }
 0x18a   : > { %v879_v60 = vsel %vm863_vm14, %v860_v7, %v708_v15  ;;  %v871_v40 = vsel %vm863_vm14, %v852_v55, %v700_v45 }
 0x18d   : > { %v746_v13 = vpop.permute.xlu1 %745  ;;  %v738_v8 = vpop.permute.xlu0 %737 }
 0x18e   : > { %v898_v25 = vsel %vm882_vm15, %v879_v60, %v746_v13  ;;  %v890_v57 = vsel %vm882_vm15, %v871_v40, %v738_v8 }
 0x18f   : > { %1360 = vmatmul.mubr.msk.bf16.gmra.mrb[8].mxu1 %vm921_vm0, %v898_v25  ;;  %1344 = vmatmul.mubr.msk.bf16.gmra.mrb[12].mxu0 %vm921_vm0, %v890_v57 }
 0x190   : > { %1363 = vmatprep.mubr.msk.bf16.mxu1 %vm1802_vm7, %v2976_v54  ;;  %1347 = vmatprep.mubr.msk.bf16.mxu0 %vm1802_vm7, %v2976_v54 }
 0x191   : > { %v442_v58 = vpop.permute.xlu1 %441  ;;  %v434_v16 = vpop.permute.xlu0 %433 }
 0x192   : > { %v767_v29 = vsel %vm749_vm8, %v2209_v59, %v442_v58  ;;  %v759_v53 = vsel %vm749_vm8, %v2225_v9, %v434_v16 }
 0x195   : > { %v480_v41 = vpop.permute.xlu1 %479  ;;  %v472_v5 = vpop.permute.xlu0 %471 }
 0x196   : > { %v786_v24 = vsel %vm768_vm9, %v767_v29, %v480_v41  ;;  %v778_v54 = vsel %vm768_vm9, %v759_v53, %v472_v5 }
 0x199   : > { %v508_v4 = vpop.permute.xlu1 %507  ;;  %v500_v36 = vpop.permute.xlu0 %499 }
 0x19a   : > { %v805_v22 = vsel %vm787_vm10, %v786_v24, %v508_v4  ;;  %v797_v10 = vsel %vm787_vm10, %v778_v54, %v500_v36 }
 0x19d   : > { %v576_v61 = vpop.permute.xlu1 %575  ;;  %v568_v19 = vpop.permute.xlu0 %567 }
 0x19e   : > { %v824_v21 = vsel %vm806_vm11, %v805_v22, %v576_v61  ;;  %v816_v32 = vsel %vm806_vm11, %v797_v10, %v568_v19 }
 0x1a1   : > { %v614_v56 = vpop.permute.xlu1 %613  ;;  %v606_v46 = vpop.permute.xlu0 %605 }
 0x1a2   : > { %v843_v59 = vsel %vm825_vm12, %v824_v21, %v614_v56  ;;  %v835_v9 = vsel %vm825_vm12, %v816_v32, %v606_v46 }
 0x1a5   : > { %v642_v34 = vpop.permute.xlu1 %641 }
 0x1a6   : > { %v634_v28 = vpop.permute.xlu0 %633  ;;  %v862_v38 = vsel %vm844_vm13, %v843_v59, %v642_v34 }
 0x1a7   : > { %v854_v62 = vsel %vm844_vm13, %v835_v9, %v634_v28 }
 0x1a9   : > { %v710_v18 = vpop.permute.xlu1 %709 }
 0x1aa   : > { %v702_v42 = vpop.permute.xlu0 %701  ;;  %v881_v31 = vsel %vm863_vm14, %v862_v38, %v710_v18 }
 0x1ab   : > { %v873_v2 = vsel %vm863_vm14, %v854_v62, %v702_v42 }
 0x1ad   : > { %v748_v37 = vpop.permute.xlu1 %747 }
 0x1ae   : > { %v900_v20 = vsel %vm882_vm15, %v881_v31, %v748_v37  ;;  %v740_v14 = vpop.permute.xlu0 %739 }
 0x1af   : > { %v892_v49 = vsel %vm882_vm15, %v873_v2, %v740_v14  ;;  %1364 = vmatmul.mubr.msk.bf16.gmra.mrb[12].mxu1 %vm921_vm0, %v900_v20 }
 0x1b0   : > { %1348 = vmatmul.mubr.msk.bf16.gmra.mrb[16].mxu0 %vm921_vm0, %v892_v49 }
 0x206   : > { %v978_v11 = vpop.f32.mrb[0].mxu0 }
 0x207   : > { %v1056_v27 = vmul.f32 %v2764_v44, %v978_v11  ;;  %v1333_v6 = vpop.f32.mrb[1].mxu0 }
 0x208   : > { %v981_v51 = vpop.f32.mrb[2].mxu0 }
 0x209   : > { %v1081_v17 = vadd.f32 %v2768_v12, %v1056_v27  ;;  %v1057_v30 = vmul.f32 %v2764_v44, %v981_v51  ;;  %v1334_v26 = vpop.f32.mrb[3].mxu0 }
 0x20b   : > { %v1099_v43 = vmax.f32 %v1081_v17, 0.0  ;;  %v1082_v3 = vadd.f32 %v2768_v12, %v1057_v30 }
 0x20d   : > { %1117 = vst [vmem:[%s2774_s14] sm:$0xff] %v1099_v43  ;;  %v1100_v23 = vmax.f32 %v1082_v3, 0.0 }
 0x20f   : > { %1118 = vst [vmem:[%s2774_s14 + $0x8] sm:$0xff] %v1100_v23 }
 0x222   : > { %v1018_v1 = vpop.f32.mrb[0].mxu1  ;;  %v986_v50 = vpop.f32.mrb[4].mxu0 }
 0x223   : > { %v1066_v48 = vmul.f32 %v2764_v44, %v1018_v1  ;;  %v1353_v52 = vpop.f32.mrb[1].mxu1  ;;  %v1058_v63 = vmul.f32 %v2764_v44, %v986_v50  ;;  %v1337_v15 = vpop.f32.mrb[5].mxu0 }
 0x224   : > { %v1021_v39 = vpop.f32.mrb[2].mxu1  ;;  %v989_v45 = vpop.f32.mrb[6].mxu0 }
 0x225   : > { %v1091_v0 = vadd.f32 %v2768_v12, %v1066_v48  ;;  %v1067_v33 = vmul.f32 %v2764_v44, %v1021_v39  ;;  %v1354_v35 = vpop.f32.mrb[3].mxu1  ;;  %v1083_v47 = vadd.f32 %v2768_v12, %v1058_v63  ;;  %v1059_v7 = vmul.f32 %v2764_v44, %v989_v45  ;;  %v1338_v55 = vpop.f32.mrb[7].mxu0 }
 0x227   : > { %v1109_v60 = vmax.f32 %v1091_v0, 0.0  ;;  %v1092_v13 = vadd.f32 %v2768_v12, %v1067_v33  ;;  %v1101_v40 = vmax.f32 %v1083_v47, 0.0  ;;  %v1084_v25 = vadd.f32 %v2768_v12, %v1059_v7 }
 0x229   : > { %1127 = vst [vmem:[%s2774_s14 + $0x50] sm:$0xff] %v1109_v60  ;;  %v1110_v8 = vmax.f32 %v1092_v13, 0.0  ;;  %1119 = vst [vmem:[%s2774_s14 + $0x10] sm:$0xff] %v1101_v40  ;;  %v1102_v57 = vmax.f32 %v1084_v25, 0.0 }
 0x22b   : > { %1128 = vst [vmem:[%s2774_s14 + $0x58] sm:$0xff] %v1110_v8  ;;  %1120 = vst [vmem:[%s2774_s14 + $0x18] sm:$0xff] %v1102_v57 }
 0x242   : > { %v1026_v58 = vpop.f32.mrb[4].mxu1  ;;  %v994_v16 = vpop.f32.mrb[8].mxu0 }
 0x243   : > { %v1068_v41 = vmul.f32 %v2764_v44, %v1026_v58  ;;  %v1357_v5 = vpop.f32.mrb[5].mxu1  ;;  %v1060_v4 = vmul.f32 %v2764_v44, %v994_v16  ;;  %v1341_v36 = vpop.f32.mrb[9].mxu0 }
 0x244   : > { %v1029_v61 = vpop.f32.mrb[6].mxu1  ;;  %v997_v56 = vpop.f32.mrb[10].mxu0 }
 0x245   : > { %v1093_v19 = vadd.f32 %v2768_v12, %v1068_v41  ;;  %v1069_v46 = vmul.f32 %v2764_v44, %v1029_v61  ;;  %v1358_v34 = vpop.f32.mrb[7].mxu1  ;;  %v1085_v28 = vadd.f32 %v2768_v12, %v1060_v4  ;;  %v1061_v29 = vmul.f32 %v2764_v44, %v997_v56  ;;  %v1342_v53 = vpop.f32.mrb[11].mxu0 }
 0x247   : > { %v1111_v24 = vmax.f32 %v1093_v19, 0.0  ;;  %v1094_v54 = vadd.f32 %v2768_v12, %v1069_v46  ;;  %v1103_v22 = vmax.f32 %v1085_v28, 0.0  ;;  %v1086_v18 = vadd.f32 %v2768_v12, %v1061_v29 }
 0x249   : > { %1129 = vst [vmem:[%s2774_s14 + $0x60] sm:$0xff] %v1111_v24  ;;  %v1112_v10 = vmax.f32 %v1094_v54, 0.0  ;;  %1121 = vst [vmem:[%s2774_s14 + $0x20] sm:$0xff] %v1103_v22  ;;  %v1104_v21 = vmax.f32 %v1086_v18, 0.0 }
 0x24b   : > { %1130 = vst [vmem:[%s2774_s14 + $0x68] sm:$0xff] %v1112_v10  ;;  %1122 = vst [vmem:[%s2774_s14 + $0x28] sm:$0xff] %v1104_v21 }
 0x262   : > { %v1034_v42 = vpop.f32.mrb[8].mxu1  ;;  %v1002_v32 = vpop.f32.mrb[12].mxu0 }
 0x263   : > { %v1070_v59 = vmul.f32 %v2764_v44, %v1034_v42  ;;  %v1361_v9 = vpop.f32.mrb[9].mxu1  ;;  %v1062_v38 = vmul.f32 %v2764_v44, %v1002_v32  ;;  %v1345_v62 = vpop.f32.mrb[13].mxu0 }
 0x264   : > { %v1037_v31 = vpop.f32.mrb[10].mxu1  ;;  %v1005_v2 = vpop.f32.mrb[14].mxu0 }
 0x265   : > { %v1095_v37 = vadd.f32 %v2768_v12, %v1070_v59  ;;  %v1071_v20 = vmul.f32 %v2764_v44, %v1037_v31  ;;  %v1362_v14 = vpop.f32.mrb[11].mxu1  ;;  %v1087_v49 = vadd.f32 %v2768_v12, %v1062_v38  ;;  %v1063_v11 = vmul.f32 %v2764_v44, %v1005_v2  ;;  %v1346_v27 = vpop.f32.mrb[15].mxu0 }
 0x267   : > { %v1113_v6 = vmax.f32 %v1095_v37, 0.0  ;;  %v1096_v51 = vadd.f32 %v2768_v12, %v1071_v20  ;;  %v1105_v17 = vmax.f32 %v1087_v49, 0.0  ;;  %v1088_v30 = vadd.f32 %v2768_v12, %v1063_v11 }
 0x269   : > { %1131 = vst [vmem:[%s2774_s14 + $0x70] sm:$0xff] %v1113_v6  ;;  %v1114_v26 = vmax.f32 %v1096_v51, 0.0  ;;  %1123 = vst [vmem:[%s2774_s14 + $0x30] sm:$0xff] %v1105_v17  ;;  %v1106_v43 = vmax.f32 %v1088_v30, 0.0 }
 0x26b   : > { %1132 = vst [vmem:[%s2774_s14 + $0x78] sm:$0xff] %v1114_v26  ;;  %1124 = vst [vmem:[%s2774_s14 + $0x38] sm:$0xff] %v1106_v43 }
 0x282   : > { %v1042_v3 = vpop.f32.mrb[12].mxu1 }
 0x283   : > { %v1010_v23 = vpop.f32.mrb[16].mxu0  ;;  %v1072_v1 = vmul.f32 %v2764_v44, %v1042_v3  ;;  %v1365_v50 = vpop.f32.mrb[13].mxu1 }
 0x284   : > { %v1064_v48 = vmul.f32 %v2764_v44, %v1010_v23  ;;  %v1349_v52 = vpop.f32.mrb[17].mxu0  ;;  %v1045_v63 = vpop.f32.mrb[14].mxu1 }
 0x285   : > { %v1097_v15 = vadd.f32 %v2768_v12, %v1072_v1  ;;  %v1013_v39 = vpop.f32.mrb[18].mxu0  ;;  %v1073_v0 = vmul.f32 %v2764_v44, %v1045_v63  ;;  %v1366_v45 = vpop.f32.mrb[15].mxu1 }
 0x286   : > { %v1089_v33 = vadd.f32 %v2768_v12, %v1064_v48  ;;  %v1065_v35 = vmul.f32 %v2764_v44, %v1013_v39  ;;  %v1350_v47 = vpop.f32.mrb[19].mxu0 }
 0x287   : > { %v1115_v7 = vmax.f32 %v1097_v15, 0.0  ;;  %v1098_v55 = vadd.f32 %v2768_v12, %v1073_v0 }
 0x288   : > { %v1107_v60 = vmax.f32 %v1089_v33, 0.0  ;;  %v1090_v13 = vadd.f32 %v2768_v12, %v1065_v35 }
 0x289   : > { %1133 = vst [vmem:[%s2774_s14 + $0x80] sm:$0xff] %v1115_v7  ;;  %v1116_v40 = vmax.f32 %v1098_v55, 0.0 }
 0x28a   : > { %1125 = vst [vmem:[%s2774_s14 + $0x40] sm:$0xff] %v1107_v60  ;;  %v1108_v44 = vmax.f32 %v1090_v13, 0.0 }
 0x28b   : > { %1134 = vst [vmem:[%s2774_s14 + $0x88] sm:$0xff] %v1116_v40 }
 0x28c   : > { %1126 = vst [vmem:[%s2774_s14 + $0x48] sm:$0xff] %v1108_v44 }
 0x28d   : > { %1668 = shalt.err (!%p1665_p12)
}
 0x28e   : > { %s1669_s1 = scalar_lea.hbm %s2832_s9, 2304  ;;  %s1673_s2 = scalar_lea.hbm %s2995_s8, 9216 }
 0x28f   : > { %p1670_p4 = scmp.ne.s32.totalorder %s2832_s9, %s1669_s1  ;;  %p1674_p0 = scmp.lt.u32.totalorder %s2832_s9, %s2995_s8 }
 0x290   : > { %p1675_p1 = scmp.lt.u32.totalorder %s1673_s2, %s1669_s1  ;;  %p1677_p10 = scmp.lt.u32.totalorder %s1669_s1, %s2832_s9 }
 0x291   : > { %p1671_p7 = pnand %p1670_p4, %p2996_p2 }
 0x292   : > { %p1676_p11 = por %p1675_p1, %p1674_p0 }
 0x293   : > { %p1672_p3 = pneg %p1671_p7 }
 0x294   : > { %p1678_p9 = por %p1677_p10, %p1676_p11 }
 0x296   : > { %p1679_p5 = pnand %p1678_p9, %p1672_p3 }
 0x298   : > { %1682 = shalt.err (!%p1679_p5)
}
 0x299   : > { %s1804_s28 = smov 128  }
 0x29a   : > { %1392 = dma.vmem_to_hbm [thread:$0]  (%p2996_p2), %s2826_s21, 2304, %s2832_s9, %s2838_s12, %s1804_s28, %s1804_s28, %s1795_s30  }
 0x29b PF: > { %s2997_s27 = sld [smem:[#allocation15_spill]]  ;;  %s2998_s22 = sld [smem:[#allocation18_spill]] }
 0x29c   : > { %p1419_p13 = scmp.ge.s32.totalorder %s1785_s25, 2 }
 0x2a1   : > { %s1166_s18 = sand.u32 1, %s2997_s27   ;;  %p2999_p6 = scmp.ne.s32.totalorder %s2998_s22, 0 }
 0x2a2   : > { %s1167_s11 = scalar_lea.sflag [#allocation4], %s1166_s18 }
 0x2a3   : > { %p1409_p8 = pnand %p1419_p13, %p2999_p6 }
 0x2a5   : > { %1740 = dma.done.wait (!%p1409_p8), %s1167_s11, 2304  }
 0x2a6   : > { %1742 = vsyncadd (!%p1409_p8), %s1167_s11, 4294964992  ;;  %s22_s25 = sadd.s32 1, %s1785_s25   ;;  %s3000_s26 = smov %s2032_s15 }
 0x2a7   : > { %p19_p12 = scmp.ge.s32.totalorder %s22_s25, 6   ;;  %s3001_s15 = smov %s1749_s16 }
 0x2a8   : > { %s3002_s16 = smov %s1753_s17  ;;  %s3003_s17 = smov %s3000_s26 }
 0x2a9   : > { %s3004_s18 = smov %s1761_s19  ;;  %s3005_s19 = smov %s1765_s20 }
 0x2aa   : > { %s3006_s20 = smov %s2027_s4  ;;  %s3007_s21 = smov %s1777_s23 }
 0x2ab   : > { %s3008_s22 = smov %s1781_s24  ;;  %s3009_s23 = smov %s3012_s6 }
 0x2ac   : > { %s3010_s24 = smov %s3016_s5  ;;  %21 = sbr.rel (!%p19_p12) target bundleno = 15 (0xf), region = 94 }
 0x2b3   :  { %1172 = vsyncpa [#allocation3], 1 }
 0x2b4   :  { %1174 = vsyncpa [#allocation3 + $0x1], 1 }
 0x2b5   :  { %1175 = vsyncpa [#allocation6], 1 }
 0x2b6   :  { %1176 = vsyncpa [#allocation9], 1 }
 0x2b7   :  { %1177 = vsyncpa [#allocation4], 1 }
 0x2b8   :  { %1179 = vsyncpa [#allocation4 + $0x1], 1 }

</bundles_post_ra>
